<compile_context>
chip_gen: v6e
topology: v6e:2x2x1
jax: 0.10.0
libtpu: 0.0.40
codegen_flags: <defaults>
</compile_context>

<pallas_src>
import math

import jax
import jax.numpy as jnp
from jax.experimental import pallas as pl
from jax.experimental.pallas import tpu as pltpu


def _noisy_linear_kernel(x_ref, wmu_ref, wsig_ref, weps_ref, b_ref,
                         o_ref, acc_ref):
    k = pl.program_id(2)

    @pl.when(k == 0)
    def _():
        acc_ref[...] = jnp.zeros_like(acc_ref)

    # Effective (noisy) weight tile (TK, TN), composed on the VPU.
    w = wmu_ref[...] + wsig_ref[...] * weps_ref[...]

    # Plain K-major (TM, TK) x (TK, TN): MXU matmul, f32 accumulation,
    # no transpose of the freshly composed tile.
    acc_ref[...] += jnp.dot(x_ref[...], w, preferred_element_type=jnp.float32)

    @pl.when(k == pl.num_programs(2) - 1)
    def _():
        o_ref[...] = (acc_ref[...] + b_ref[...]).astype(o_ref.dtype)


def _pick_tile(dim, pref, mult):
    """Largest tile <= pref that equals `dim` or is a multiple-of-`mult`
    divisor of `dim` (keeps the BlockSpec (8,128) constraint satisfied)."""
    if dim <= pref:
        return dim
    t = (pref // mult) * mult
    while t >= mult:
        if dim % t == 0:
            return t
        t -= mult
    return dim


def noisy_linear(x, weight_mu_t, weight_sigma_t, weight_eps_t,
                 bias_mu, bias_sigma, bias_eps, *, tm=256, tn=512, tk=2048):
    """Pallas NoisyLinear forward.

    x:                (B, in_features)
    weight_*_t:       (in_features, out_features)   -- pre-transposed layout
    bias_*:           (out_features,)
    Returns y = x @ (weight_mu_t + weight_sigma_t * weight_eps_t) + b_eff,
    identical to F.linear(x, mu + sigma*eps, bmu + bsig*beps).
    """
    B, in_f = x.shape
    in_f2, out_f = weight_mu_t.shape
    assert in_f == in_f2, (in_f, in_f2)

    # Bias composed in the wrapper: O(out) work, one DMA stream instead of 3.
    b_eff = (bias_mu + bias_sigma * bias_eps).reshape(1, out_f)

    xsz = jnp.dtype(x.dtype).itemsize
    wsz = jnp.dtype(weight_mu_t.dtype).itemsize
    bsz = jnp.dtype(b_eff.dtype).itemsize

    # --- tile selection -----------------------------------------------------
    TM = _pick_tile(B, tm, 8)
    TN = _pick_tile(out_f, tn, 128)
    # v7x megacore: prefer >=2 tiles on the parallel out-feature axis.
    if out_f // TN < 2 and out_f >= 256 and (out_f // 2) % 128 == 0:
        TN = _pick_tile(out_f, out_f // 2, 128)
    TK = _pick_tile(in_f, tk, 128)

    def vmem_bytes(tm_, tn_, tk_):
        return (2 * tm_ * tk_ * xsz            # x (double-buffered)
                + 3 * 2 * tk_ * tn_ * wsz      # 3 weight streams, double-buffered
                + 2 * tn_ * bsz                # composed bias
                + 2 * tm_ * tn_ * xsz          # output
                + tm_ * tn_ * 4)               # f32 accumulator scratch

    # Stay well under v7x's 64 MiB physical VMEM (leave headroom for Mosaic).
    while vmem_bytes(TM, TN, TK) > (44 << 20) and TK > 128:
        new_tk = _pick_tile(in_f, TK // 2, 128)
        if new_tk >= TK:
            break
        TK = new_tk

    m_tiles = B // TM
    n_tiles = out_f // TN
    k_tiles = in_f // TK

    # Explicit scoped-VMEM limit (v5e default is 16 MiB, v6e/v7x 32 MiB).
    vmem_limit = int(min(64 << 20,
                         max(32 << 20, int(vmem_bytes(TM, TN, TK) * 1.5))))

    # Advisory cost: includes x re-streaming per n-tile and weight re-streaming
    # per m-tile implied by the index maps.
    cost = pl.CostEstimate(
        flops=2 * B * in_f * out_f,
        bytes_accessed=int(n_tiles * B * in_f * xsz
                           + m_tiles * 3 * out_f * in_f * wsz
                           + m_tiles * out_f * bsz
                           + B * out_f * xsz),
        transcendentals=0)

    grid_spec = pltpu.PrefetchScalarGridSpec(
        num_scalar_prefetch=0,
        grid=(m_tiles, n_tiles, k_tiles),                       # K axis last
        in_specs=[
            pl.BlockSpec((TM, TK), lambda m, n, k: (m, k)),     # x
            pl.BlockSpec((TK, TN), lambda m, n, k: (k, n)),     # weight_mu_t
            pl.BlockSpec((TK, TN), lambda m, n, k: (k, n)),     # weight_sigma_t
            pl.BlockSpec((TK, TN), lambda m, n, k: (k, n)),     # weight_eps_t
            pl.BlockSpec((1, TN), lambda m, n, k: (0, n)),      # composed bias
        ],
        out_specs=pl.BlockSpec((TM, TN), lambda m, n, k: (m, n)),
        scratch_shapes=[pltpu.VMEM((TM, TN), jnp.float32)],
    )

    return pl.pallas_call(
        _noisy_linear_kernel,
        out_shape=jax.ShapeDtypeStruct((B, out_f), x.dtype),
        grid_spec=grid_spec,
        compiler_params=pltpu.CompilerParams(
            dimension_semantics=("parallel", "parallel", "arbitrary"),
            vmem_limit_bytes=vmem_limit),
        cost_estimate=cost,
    )(x, weight_mu_t, weight_sigma_t, weight_eps_t, b_eff)


def init_noisy_linear_params(key, in_features, out_features,
                             sigma_zero=0.5, training=True,
                             dtype=jnp.float32):
    """Deterministic parameter init mirroring NoisyLinear.__init__/reset_*.

    Weight tensors are stored pre-transposed as (in_features, out_features)
    (TPU-friendly K-major layout); math is identical to the (out, in) module
    layout since y = x @ W.T == x @ W_t.
    """
    k_wmu, k_bmu, k_weps, k_beps = jax.random.split(key, 4)
    bound = 1.0 / math.sqrt(in_features)
    sigma = sigma_zero / math.sqrt(in_features)

    weight_mu_t = jax.random.uniform(
        k_wmu, (in_features, out_features), dtype, -bound, bound)
    weight_sigma_t = jnp.full((in_features, out_features), sigma, dtype)
    bias_mu = jax.random.uniform(
        k_bmu, (out_features,), dtype, -bound, bound)
    bias_sigma = jnp.full((out_features,), sigma, dtype)

    if training:  # reset_noise() in training mode: eps ~ N(0, 1)
        weight_eps_t = jax.random.normal(
            k_weps, (in_features, out_features), dtype)
        bias_eps = jax.random.normal(k_beps, (out_features,), dtype)
    else:         # eval mode: eps = 0
        weight_eps_t = jnp.zeros((in_features, out_features), dtype)
        bias_eps = jnp.zeros((out_features,), dtype)

    return (weight_mu_t, weight_sigma_t, weight_eps_t,
            bias_mu, bias_sigma, bias_eps)


def _reference(x, wmu_t, wsig_t, weps_t, bmu, bsig, beps):
    w = (wmu_t + wsig_t * weps_t).astype(jnp.float32)
    b = (bmu + bsig * beps).astype(jnp.float32)
    return (x.astype(jnp.float32) @ w + b).astype(x.dtype)


if __name__ == "__main__":
    key = jax.random.PRNGKey(0)
    k_params, k_x, k_params2, k_x2 = jax.random.split(key, 4)

    # Small shapes consistent with the module (single grid point).
    batch, in_features, out_features = 8, 32, 64
    params = init_noisy_linear_params(k_params, in_features, out_features,
                                      sigma_zero=0.5, training=True)
    x = jax.random.normal(k_x, (batch, in_features), jnp.float32)

    out = jax.block_until_ready(noisy_linear(x, *params))
    ref = _reference(x, *params)
    assert out.shape == (batch, out_features)
    assert jnp.allclose(out, ref, atol=1e-5, rtol=1e-5)

    # Larger shape: exercise multi-tile (parallel, parallel, arbitrary) grid,
    # K-accumulation init/finalize, and lane-dense output tiles.
    b2, in2, out2 = 8, 1024, 512
    params2 = init_noisy_linear_params(k_params2, in2, out2,
                                       sigma_zero=0.5, training=True)
    x2 = jax.random.normal(k_x2, (b2, in2), jnp.float32)
    ref2 = _reference(x2, *params2)

    # (a) small tiles -> n_tiles=2, k_tiles=4 (accumulator path).
    out2a = jax.block_until_ready(noisy_linear(x2, *params2, tn=256, tk=256))
    assert out2a.shape == (b2, out2)
    assert jnp.allclose(out2a, ref2, atol=1e-4, rtol=1e-4)

    # (b) default (large) tiles -> TN auto-capped to 256 for >=2 parallel tiles.
    out2b = jax.block_until_ready(noisy_linear(x2, *params2))
    assert jnp.allclose(out2b, ref2, atol=1e-4, rtol=1e-4)

    print("KERNEL_OK")
</pallas_src>

<mosaic_0001>
module attributes {stable_mosaic.version = 11 : i64} {
  func.func @_noisy_linear_kernel(%arg0: i32, %arg1: i32, %arg2: i32, %arg3: memref<8x32xf32, #tpu.memory_space<vmem>>, %arg4: memref<32x64xf32, #tpu.memory_space<vmem>>, %arg5: memref<32x64xf32, #tpu.memory_space<vmem>>, %arg6: memref<32x64xf32, #tpu.memory_space<vmem>>, %arg7: memref<1x64xf32, #tpu.memory_space<vmem>>, %arg8: memref<8x64xf32, #tpu.memory_space<vmem>>, %arg9: memref<8x64xf32, #tpu.memory_space<vmem>>) attributes {dimension_semantics = [#tpu.dimension_semantics<parallel>, #tpu.dimension_semantics<parallel>, #tpu.dimension_semantics<arbitrary>], iteration_bounds = array<i64: 1, 1, 1>, scalar_prefetch = 0 : i64, scratch_operands = 1 : i64, tpu.core_type = #tpu.core_type<tc>, window_params = [{transform_indices = @transform_0, window_bounds = array<i64: 8, 32>}, {transform_indices = @transform_1, window_bounds = array<i64: 32, 64>}, {transform_indices = @transform_2, window_bounds = array<i64: 32, 64>}, {transform_indices = @transform_3, window_bounds = array<i64: 32, 64>}, {transform_indices = @transform_4, window_bounds = array<i64: 1, 64>}, {transform_indices = @transform_5, window_bounds = array<i64: 8, 64>}]} {
    %c0_i32 = arith.constant 0 : i32
    %0 = arith.cmpi eq, %arg2, %c0_i32 : i32
    %1 = arith.extui %0 : i1 to i32
    %c0_i32_0 = arith.constant 0 : i32
    %2 = arith.cmpi ne, %1, %c0_i32_0 : i32
    scf.if %2 {
      %cst_14 = arith.constant 0.000000e+00 : f32
      %16 = vector.broadcast %cst_14 : f32 to vector<8x64xf32>
      %c0_15 = arith.constant 0 : index
      %c0_16 = arith.constant 0 : index
      %17 = vector.load %arg9[%c0_15, %c0_16] : memref<8x64xf32, #tpu.memory_space<vmem>>, vector<8x64xf32>
      tpu.vector_store %arg9[%c0_15, %c0_16], %16 {strides = array<i32>} : memref<8x64xf32, #tpu.memory_space<vmem>>, vector<8x64xf32>,
    } else {
    }
    %c0 = arith.constant 0 : index
    %c0_1 = arith.constant 0 : index
    %3 = vector.load %arg4[%c0, %c0_1] : memref<32x64xf32, #tpu.memory_space<vmem>>, vector<32x64xf32>
    %c0_2 = arith.constant 0 : index
    %c0_3 = arith.constant 0 : index
    %4 = vector.load %arg5[%c0_2, %c0_3] : memref<32x64xf32, #tpu.memory_space<vmem>>, vector<32x64xf32>
    %c0_4 = arith.constant 0 : index
    %c0_5 = arith.constant 0 : index
    %5 = vector.load %arg6[%c0_4, %c0_5] : memref<32x64xf32, #tpu.memory_space<vmem>>, vector<32x64xf32>
    %6 = arith.mulf %4, %5 : vector<32x64xf32>
    %7 = arith.addf %3, %6 : vector<32x64xf32>
    %c0_6 = arith.constant 0 : index
    %c0_7 = arith.constant 0 : index
    %8 = vector.load %arg9[%c0_6, %c0_7] : memref<8x64xf32, #tpu.memory_space<vmem>>, vector<8x64xf32>
    %c0_8 = arith.constant 0 : index
    %c0_9 = arith.constant 0 : index
    %9 = vector.load %arg3[%c0_8, %c0_9] : memref<8x32xf32, #tpu.memory_space<vmem>>, vector<8x32xf32>
    %cst = arith.constant dense<0.000000e+00> : vector<8x64xf32>
    %10 = tpu.matmul %9, %7, %cst {dimension_numbers = #tpu.dot_dimension_numbers<[1], [0], [0], [1], [0, 0, 1, 1], [], []>} : vector<8x32xf32>, vector<32x64xf32>, vector<8x64xf32> -> vector<8x64xf32>
    %11 = arith.addf %8, %10 : vector<8x64xf32>
    %c0_10 = arith.constant 0 : index
    %c0_11 = arith.constant 0 : index
    %12 = vector.load %arg9[%c0_10, %c0_11] : memref<8x64xf32, #tpu.memory_space<vmem>>, vector<8x64xf32>
    tpu.vector_store %arg9[%c0_10, %c0_11], %11 {strides = array<i32>} : memref<8x64xf32, #tpu.memory_space<vmem>>, vector<8x64xf32>,
    %c0_i32_12 = arith.constant 0 : i32
    %13 = arith.cmpi eq, %arg2, %c0_i32_12 : i32
    %14 = arith.extui %13 : i1 to i32
    %c0_i32_13 = arith.constant 0 : i32
    %15 = arith.cmpi ne, %14, %c0_i32_13 : i32
    scf.if %15 {
      %c0_14 = arith.constant 0 : index
      %c0_15 = arith.constant 0 : index
      %16 = vector.load %arg9[%c0_14, %c0_15] : memref<8x64xf32, #tpu.memory_space<vmem>>, vector<8x64xf32>
      %c0_16 = arith.constant 0 : index
      %c0_17 = arith.constant 0 : index
      %17 = vector.load %arg7[%c0_16, %c0_17] : memref<1x64xf32, #tpu.memory_space<vmem>>, vector<1x64xf32>
      %18 = vector.broadcast %17 : vector<1x64xf32> to vector<8x64xf32>
      %19 = arith.addf %16, %18 : vector<8x64xf32>
      %c0_18 = arith.constant 0 : index
      %c0_19 = arith.constant 0 : index
      %20 = vector.load %arg8[%c0_18, %c0_19] : memref<8x64xf32, #tpu.memory_space<vmem>>, vector<8x64xf32>
      tpu.vector_store %arg8[%c0_18, %c0_19], %19 {strides = array<i32>} : memref<8x64xf32, #tpu.memory_space<vmem>>, vector<8x64xf32>,
    } else {
    }
    return
  }
  func.func @transform_0(%arg0: i32, %arg1: i32, %arg2: i32) -> (i32, i32) {
    %c0_i32 = arith.constant 0 : i32
    return %arg0, %arg2 : i32, i32
  }
  func.func @transform_1(%arg0: i32, %arg1: i32, %arg2: i32) -> (i32, i32) {
    %c0_i32 = arith.constant 0 : i32
    return %arg2, %arg1 : i32, i32
  }
  func.func @transform_2(%arg0: i32, %arg1: i32, %arg2: i32) -> (i32, i32) {
    %c0_i32 = arith.constant 0 : i32
    return %arg2, %arg1 : i32, i32
  }
  func.func @transform_3(%arg0: i32, %arg1: i32, %arg2: i32) -> (i32, i32) {
    %c0_i32 = arith.constant 0 : i32
    return %arg2, %arg1 : i32, i32
  }
  func.func @transform_4(%arg0: i32, %arg1: i32, %arg2: i32) -> (i32, i32) {
    %c0_i32 = arith.constant 0 : i32
    %c0_i32_0 = arith.constant 0 : i32
    return %c0_i32, %arg1 : i32, i32
  }
  func.func @transform_5(%arg0: i32, %arg1: i32, %arg2: i32) -> (i32, i32) {
    %c0_i32 = arith.constant 0 : i32
    return %arg0, %arg1 : i32, i32
  }
}

</mosaic_0001>

<bundles_post_ra>
// kernel: tpu_custom_call.1
= control target key start
LH: loop header
LB: loop body
LE: loop exit
PB: predicated region body
PF: predicated region fallthrough
CT: control target
= control target key end

     0   :  { %10 = vsyncpa [#allocation4], 0  ;;  %s413_s0 = inlined_call_operand.hbm [shape: f32[8,32], index: 0, kind: input, shape index: {}]   ;;  %s414_s1 = inlined_call_operand.hbm [shape: f32[32,64], index: 1, kind: input, shape index: {}]   ;;  %s415_s2 = inlined_call_operand.hbm [shape: f32[32,64], index: 2, kind: input, shape index: {}]   ;;  %s416_s3 = inlined_call_operand.hbm [shape: f32[32,64], index: 3, kind: input, shape index: {}]   ;;  %s417_s4 = inlined_call_operand.vmem [shape: f32[1,64], index: 4, kind: input, shape index: {}]   ;;  %s418_s5 = inlined_call_operand.hbm [shape: f32[8,64], index: 5, kind: output, shape index: {}]  }
   0x1   :  { %11 = vsyncpa [#allocation7], 0 }
   0x2   :  { %12 = vsyncpa [#allocation10], 0 }
   0x3   :  { %13 = vsyncpa [#allocation5], 0  ;;  %s344_s18 = smov [#allocation6]  }
   0x4   :  { %s29_s19 = sshll.u32 %s344_s18, 4  ;;  %s30_s19 = int_to_ptr.vmem [resolvable:$true] %s29_s19 }
   0x5   :  { %s244_s20 = scalar_lea.vmem %s30_s19, 512  ;;  %p249_p1 = scmp.lt.s32.totalorder %s30_s19, %s30_s19 }
   0x6   :  { %p245_p0 = scmp.ne.s32.totalorder %s30_s19, %s244_s20  ;;  %p250_p2 = scmp.lt.s32.totalorder %s244_s20, %s244_s20 }
   0x8   :  { %p251_p3 = por %p250_p2, %p249_p1 }
   0xa   :  { %p252_p4 = pnand %p251_p3, %p245_p0 }
   0xc   :  { %255 = shalt.err (!%p252_p4)
}
   0xd   :  { %s345_s21 = smov 128   ;;  %s346_s22 = smov 8  }
   0xe   :  { %35 = dma.hbm_to_vmem [thread:$0]  %s414_s1, 512, %s30_s19, [#allocation7], %s345_s21, %s345_s21, %s346_s22  }
   0xf   :  { %s347_s25 = smov [#allocation3]   ;;  %s348_s27 = smov [#allocation8]  }
  0x10   :  { %s20_s26 = sshll.u32 %s347_s25, 4  ;;  %s41_s28 = sshll.u32 %s348_s27, 4  ;;  %s21_s26 = int_to_ptr.vmem [resolvable:$true] %s20_s26  ;;  %s42_s28 = int_to_ptr.vmem [resolvable:$true] %s41_s28 }
  0x11   :  { %s264_s29 = scalar_lea.vmem %s21_s26, 128  ;;  %p269_p6 = scmp.lt.s32.totalorder %s21_s26, %s21_s26 }
  0x12   :  { %p265_p5 = scmp.ne.s32.totalorder %s21_s26, %s264_s29  ;;  %p270_p7 = scmp.lt.s32.totalorder %s264_s29, %s264_s29 }
  0x14   :  { %p271_p8 = por %p270_p7, %p269_p6 }
  0x16   :  { %p272_p9 = pnand %p271_p8, %p265_p5 }
  0x18   :  { %275 = shalt.err (!%p272_p9)
}
  0x19   :  { %23 = dma.hbm_to_vmem [thread:$0]  %s413_s0, 128, %s21_s26, [#allocation4]  }
  0x1a   :  { %s284_s7 = scalar_lea.vmem %s42_s28, 512  ;;  %p289_p11 = scmp.lt.s32.totalorder %s42_s28, %s42_s28 }
  0x1b   :  { %p285_p10 = scmp.ne.s32.totalorder %s42_s28, %s284_s7  ;;  %p290_p12 = scmp.lt.s32.totalorder %s284_s7, %s284_s7 }
  0x1d   :  { %p291_p13 = por %p290_p12, %p289_p11 }
  0x1f   :  { %p292_p0 = pnand %p291_p13, %p285_p10 }
  0x21   :  { %295 = shalt.err (!%p292_p0)
}
  0x22   :  { %47 = dma.hbm_to_vmem [thread:$0]  %s415_s2, 512, %s42_s28, [#allocation7], %s345_s21, %s345_s21, %s346_s22  }
  0x23   :  { %s349_s9 = smov [#allocation9]  }
  0x24   :  { %s53_s10 = sshll.u32 %s349_s9, 4  ;;  %s54_s10 = int_to_ptr.vmem [resolvable:$true] %s53_s10 }
  0x25   :  { %s304_s11 = scalar_lea.vmem %s54_s10, 512  ;;  %p309_p2 = scmp.lt.s32.totalorder %s54_s10, %s54_s10 }
  0x26   :  { %p305_p1 = scmp.ne.s32.totalorder %s54_s10, %s304_s11  ;;  %p310_p3 = scmp.lt.s32.totalorder %s304_s11, %s304_s11 }
  0x28   :  { %p311_p4 = por %p310_p3, %p309_p2 }
  0x2a   :  { %p312_p5 = pnand %p311_p4, %p305_p1 }
  0x2c   :  { %315 = shalt.err (!%p312_p5)
}
  0x2d   :  { %59 = dma.hbm_to_vmem [thread:$0]  %s416_s3, 512, %s54_s10, [#allocation10], %s345_s21, %s345_s21, %s346_s22  }
  0x2e   :  { %336 = dma.done.wait [#allocation4], 128  }
  0x2f   :  { %337 = vsyncadd [#allocation4], 4294967168 }
  0x30   :  { %338 = dma.done.wait [#allocation7], 1024  }
  0x31   :  { %339 = vsyncadd [#allocation7], 4294966272 }
  0x32   :  { %340 = dma.done.wait [#allocation10], 512  }
  0x33   :  { %341 = vsyncadd [#allocation10], 4294966784  ;;  %vm78_vm0 = vcmask 523264   ;;  %v350_v0 = vmov 0.0   ;;  %vm351_vm1 = vmmov 0   ;;  %v83_v1 = vld [vmem:[#allocation6 + $0x18] sm:$0xff] }
  0x34   :  { %216 = vmatprep.subr.mxu0 %v350_v0  ;;  %224 = vmatprep.mubr.msk.f32.mxu0 %vm351_vm1, %v350_v0  ;;  %79 = vst.msk [vmem:[#allocation2] sm:$0xff] %vm78_vm0, %v350_v0  ;;  %v87_v2 = vld [vmem:[#allocation8 + $0x18] sm:$0xff]  ;;  %v82_v5 = vld [vmem:[#allocation6 + $0x10] sm:$0xff]  ;;  %v81_v9 = vld [vmem:[#allocation6 + $0x8] sm:$0xff]  ;;  %vm102_vm2 = vcmask 261120   ;;  %s352_s13 = smov [#allocation11]  }
  0x35   :  { %v91_v3 = vld [vmem:[#allocation9 + $0x18] sm:$0xff]  ;;  %v86_v6 = vld [vmem:[#allocation8 + $0x10] sm:$0xff]  ;;  %v85_v10 = vld [vmem:[#allocation8 + $0x8] sm:$0xff]  ;;  %s198_s14 = sshll.u32 %s352_s13, 4  ;;  %s199_s14 = int_to_ptr.vmem [resolvable:$true] %s198_s14 }
  0x36   :  { %v95_v4 = vmul.f32 %v91_v3, %v87_v2  ;;  %v90_v7 = vld [vmem:[#allocation9 + $0x10] sm:$0xff]  ;;  %v89_v11 = vld [vmem:[#allocation9 + $0x8] sm:$0xff]  ;;  %v84_v14 = vld [vmem:[#allocation8] sm:$0xff]  ;;  %s316_s15 = scalar_lea.vmem %s199_s14, 128  ;;  %p321_p7 = scmp.lt.s32.totalorder %s199_s14, %s199_s14 }
  0x37   :  { %v94_v8 = vmul.f32 %v90_v7, %v86_v6  ;;  %v93_v13 = vmul.f32 %v89_v11, %v85_v10  ;;  %v88_v15 = vld [vmem:[#allocation9] sm:$0xff]  ;;  %v101_v21 = vld [vmem:[#allocation3] sm:$0xff]  ;;  %v210_v26 = vld [vmem:[%s417_s4] ss:$0 sm:$0xff]  ;;  %p317_p6 = scmp.ne.s32.totalorder %s199_s14, %s316_s15  ;;  %p322_p8 = scmp.lt.s32.totalorder %s316_s15, %s316_s15 }
  0x38   :  { %v99_v12 = vadd.f32 %v95_v4, %v83_v1  ;;  %v80_v17 = vld [vmem:[#allocation6] sm:$0xff]  ;;  %v92_v18 = vmul.f32 %v88_v15, %v84_v14 }
  0x39   :  { %v98_v16 = vadd.f32 %v94_v8, %v82_v5  ;;  %v97_v19 = vadd.f32 %v93_v13, %v81_v9  ;;  %p323_p9 = por %p322_p8, %p321_p7 }
  0x3a   :  { %217 = vmatpush3.msra.mxu0 %v99_v12  ;;  %v96_v20 = vadd.f32 %v92_v18, %v80_v17 }
  0x3b   :  { %218 = vmatprep.subr.mxu0 %v350_v0  ;;  %v100_v22 = vld [vmem:[#allocation2] sm:$0xff]  ;;  %p324_p10 = pnand %p323_p9, %p317_p6 }
  0x3c   :  { %219 = vmatpush3.msra.mxu0 %v98_v16 }
  0x3d   :  { %220 = vmatprep.subr.mxu0 %v350_v0 }
  0x3e   :  { %221 = vmatpush3.msra.mxu0 %v97_v19 }
  0x3f   :  { %222 = vmatprep.subr.mxu0 %v350_v0 }
  0x40   :  { %223 = vmatpush3.msra.mxu0 %v96_v20 }
  0x41   :  { %225 = vmatmul.mubr.msk.f32.vlgmr.msra.gmra.mxu0 %vm102_vm2, %v101_v21 }
 0x101   :  { %v172_v23 = vpop.f32.mrf.mxu0 }
 0x102   :  { %v176_v24 = vadd.f32 %v172_v23, %v100_v22 }
 0x103   :  { %v226_v25 = vpop.f32.mrf.mxu0 }
 0x104   :  { %178 = vst.msk [vmem:[#allocation2] sm:$0xff] %vm78_vm0, %v176_v24 }
 0x10b   :  { %v182_v27 = vld [vmem:[#allocation2] sm:$0xff] }
 0x10c   :  { %v190_v28 = vadd.f32 %v210_v26, %v182_v27 }
 0x10e   :  { %191 = vst.msk [vmem:[#allocation11] sm:$0xff] %vm78_vm0, %v190_v28 }
 0x10f   :  { %327 = shalt.err (!%p324_p10)
}
 0x110   :  { %201 = dma.vmem_to_hbm [thread:$0]  %s199_s14, 128, %s418_s5, [#allocation5]  }
 0x111   :  { %342 = dma.done.wait [#allocation5], 128  }
 0x112   :  { %343 = vsyncadd [#allocation5], 4294967168 }
 0x113   :  { %205 = vsyncpa [#allocation4], 1 }
 0x114   :  { %206 = vsyncpa [#allocation7], 1 }
 0x115   :  { %207 = vsyncpa [#allocation10], 1 }
 0x116   :  { %208 = vsyncpa [#allocation5], 1 }

</bundles_post_ra>
